<compile_context>
chip_gen: v7x
topology: tpu7x:2x2x1
jax: 0.10.0
libtpu: 0.0.40
codegen_flags: <defaults>
</compile_context>

<pallas_src>
import jax
import jax.numpy as jnp
from jax import lax
from jax.experimental import pallas as pl
from jax.experimental.pallas import tpu as pltpu

NEG_INF = -1e30
BLANK = 0


def _round_up(x, m):
    return (x + m - 1) // m * m


# ----------------------------------------------------------------------------
# Pallas kernel: fused linear (MXU) + log_softmax stats + extended-label gather
# ----------------------------------------------------------------------------
def _am_lp_ext_kernel(x_ref, w_ref, b_ref, wext_ref, bext_ref, o_ref):
    x = x_ref[...]                                              # (tT, Hp) bf16
    # Full-vocab logits: bf16 MXU inputs, f32 accumulation.
    logits = jnp.dot(x, w_ref[...], preferred_element_type=jnp.float32)
    logits = logits + b_ref[...]                                # (tT, Vp) f32
    # Numerically stable logsumexp along the vocab (lane) axis.
    m = jnp.max(logits, axis=-1, keepdims=True)
    lse = jnp.log(jnp.sum(jnp.exp(logits - m), axis=-1, keepdims=True)) + m
    # Logits restricted to this batch row's extended-label columns.
    logits_ext = jnp.dot(x, wext_ref[...], preferred_element_type=jnp.float32)
    logits_ext = logits_ext + bext_ref[...]                     # (tT, Sp) f32
    # log_softmax(logits)[:, ext]  ==  logits_ext - logsumexp(logits)
    o_ref[...] = logits_ext - lse


def am_lp_ext(x, w, b, ext):
    """Fused AM + log_softmax + extended-label gather.

    x:   (N, T, H) f32   acoustic features
    w:   (H, V)    f32   linear weight of the 'am'
    b:   (V,)      f32   linear bias
    ext: (N, S)    int32 extended CTC label sequence (blank-interleaved)
    returns lp_ext: (N, T, S) f32 log-probs at the extended-label columns.
    """
    N, T, H = x.shape
    V = w.shape[1]
    S = ext.shape[1]

    H_pad = _round_up(H, 128)
    V_pad = _round_up(V, 128)
    S_pad = _round_up(S, 128)
    t_tile = min(128, _round_up(T, 16))      # bf16 sublane-dense tile
    T_pad = _round_up(T, t_tile)

    # --- pad / cast MXU operands (bf16 inputs, f32 accumulation in-kernel) ---
    x_p = jnp.zeros((N, T_pad, H_pad), jnp.bfloat16)
    x_p = x_p.at[:, :T, :H].set(x.astype(jnp.bfloat16))
    w_p = jnp.zeros((H_pad, V_pad), jnp.bfloat16)
    w_p = w_p.at[:H, :V].set(w.astype(jnp.bfloat16))
    # Padded vocab columns get a hugely negative bias -> exp underflows to 0.
    b_vec = jnp.full((V_pad,), NEG_INF, jnp.float32).at[:V].set(b.astype(jnp.float32))
    b_p = b_vec[None, :]                                        # (1, Vp) f32

    # Per-batch extended-label weight/bias columns (cheap XLA gather outside
    # the kernel keeps the in-kernel math gather-free).
    ext_p = jnp.pad(ext.astype(jnp.int32), ((0, 0), (0, S_pad - S)))  # pad w/ blank
    w_ext = jnp.transpose(jnp.take(w_p, ext_p, axis=1), (1, 0, 2))    # (N, Hp, Sp) bf16
    b_ext = jnp.take(b_vec, ext_p, axis=0)[:, None, :]                # (N, 1, Sp) f32

    grid = (N, T_pad // t_tile)
    cost = pl.CostEstimate(
        flops=int(2 * N * T_pad * H_pad * (V_pad + S_pad)),
        transcendentals=int(N * T_pad * V_pad),
        bytes_accessed=int(
            x_p.size * 2 + w_p.size * 2 + b_p.size * 4
            + w_ext.size * 2 + b_ext.size * 4 + N * T_pad * S_pad * 4
        ),
    )

    lp_ext = pl.pallas_call(
        _am_lp_ext_kernel,
        out_shape=jax.ShapeDtypeStruct((N, T_pad, S_pad), jnp.float32),
        grid=grid,
        in_specs=[
            pl.BlockSpec((None, t_tile, H_pad), lambda n, t: (n, t, 0)),   # x tile
            pl.BlockSpec((H_pad, V_pad), lambda n, t: (0, 0)),             # W resident
            pl.BlockSpec((1, V_pad), lambda n, t: (0, 0)),                 # b resident
            pl.BlockSpec((None, H_pad, S_pad), lambda n, t: (n, 0, 0)),    # W[:,ext] per batch
            pl.BlockSpec((None, 1, S_pad), lambda n, t: (n, 0, 0)),        # b[ext]  per batch
        ],
        out_specs=pl.BlockSpec((None, t_tile, S_pad), lambda n, t: (n, t, 0)),
        compiler_params=pltpu.CompilerParams(
            dimension_semantics=("parallel", "parallel"),
            vmem_limit_bytes=64 << 20,
        ),
        cost_estimate=cost,
    )(x_p, w_p, b_p, w_ext, b_ext)

    return lp_ext[:, :T, :S]


# ----------------------------------------------------------------------------
# CTC loss (criterion) from pre-gathered extended-label log-probs.
# TODO(synk): the CTC/CTC-CRF alpha DP is inherently sequential over T and has
# no clean Pallas mapping at these sizes; it stays in plain JAX (f32 lax.scan).
# ----------------------------------------------------------------------------
def ctc_loss_from_ext(lp_ext, ext, input_lengths, label_lengths, blank=BLANK):
    """lp_ext: (N, T, S) log-probs at extended labels; ext: (N, S) int32."""
    N, T, S = lp_ext.shape

    # skip transition s-2 -> s allowed iff ext[s] != blank and ext[s] != ext[s-2]
    ext_m2 = jnp.concatenate(
        [jnp.full((N, 2), -1, jnp.int32), ext[:, :-2]], axis=1)
    skip_ok = (ext != blank) & (ext != ext_m2)

    s_idx = jnp.arange(S)[None, :]
    alpha0 = jnp.where(s_idx <= 1, lp_ext[:, 0, :], NEG_INF)

    input_lengths = input_lengths.astype(jnp.int32)

    def step(alpha, t):
        a1 = jnp.pad(alpha[:, :-1], ((0, 0), (1, 0)), constant_values=NEG_INF)
        a2 = jnp.pad(alpha[:, :-2], ((0, 0), (2, 0)), constant_values=NEG_INF)
        a2 = jnp.where(skip_ok, a2, NEG_INF)
        m = jnp.maximum(jnp.maximum(alpha, a1), a2)
        lse = m + jnp.log(jnp.exp(alpha - m) + jnp.exp(a1 - m) + jnp.exp(a2 - m))
        new = lse + lp_ext[:, t, :]
        # freeze rows whose input sequence has already ended
        new = jnp.where((t < input_lengths)[:, None], new, alpha)
        return new, None

    alpha_T, _ = lax.scan(step, alpha0, jnp.arange(1, T, dtype=jnp.int32))

    ll = label_lengths.astype(jnp.int32)
    idx1 = jnp.maximum(2 * ll - 1, 0)[:, None]        # clamp for empty targets
    idx2 = (2 * ll)[:, None]
    a_last1 = jnp.take_along_axis(alpha_T, idx1, axis=1)[:, 0]
    a_last2 = jnp.take_along_axis(alpha_T, idx2, axis=1)[:, 0]
    a_last1 = jnp.where(ll > 0, a_last1, NEG_INF)     # empty target: blank-only path
    neg_log_lik = -jnp.logaddexp(a_last1, a_last2)

    # torch.nn.CTCLoss(reduction='mean'): divide by target length, mean over batch
    denom = jnp.maximum(ll, 1).astype(jnp.float32)
    return jnp.mean(neg_log_lik / denom)


# ----------------------------------------------------------------------------
# AMTrainer.forward equivalent
# ----------------------------------------------------------------------------
def _extended_labels(labels):
    N, L = labels.shape
    S = 2 * L + 1
    ext = jnp.full((N, S), BLANK, dtype=jnp.int32)
    ext = ext.at[:, 1::2].set(labels.astype(jnp.int32))
    return ext


def am_trainer_forward(logits, labels, input_lengths, label_lengths, w, b):
    ext = _extended_labels(labels)                 # blank l1 blank l2 ... lL blank
    lens_o = input_lengths.astype(jnp.int32)       # identity length map (no subsampling)
    lp_ext = am_lp_ext(logits, w, b, ext)          # (N, T, S) fused Pallas kernel
    return ctc_loss_from_ext(lp_ext, ext, lens_o, label_lengths)


# ----------------------------------------------------------------------------
# Plain-JAX reference (same bf16 matmul precision) for a sanity check.
# ----------------------------------------------------------------------------
def am_trainer_reference(logits, labels, input_lengths, label_lengths, w, b):
    ext = _extended_labels(labels)
    N, T, H = logits.shape
    full = jnp.dot(logits.astype(jnp.bfloat16).reshape(N * T, H),
                   w.astype(jnp.bfloat16),
                   preferred_element_type=jnp.float32).reshape(N, T, -1)
    full = full + b.astype(jnp.float32)[None, None, :]
    lp = jax.nn.log_softmax(full, axis=-1)
    lp_ext = jnp.take_along_axis(lp, ext[:, None, :].astype(jnp.int32), axis=-1)
    return ctc_loss_from_ext(lp_ext, ext, input_lengths.astype(jnp.int32),
                             label_lengths)


if __name__ == "__main__":
    N, T, H, V, L = 2, 8, 32, 16, 4

    key = jax.random.PRNGKey(0)
    k_x, k_w, k_b, k_lab = jax.random.split(key, 4)

    logits = jax.random.normal(k_x, (N, T, H), dtype=jnp.float32)
    # deterministic "am" parameters (Linear H -> V, uniform like nn.Linear init)
    bound = 1.0 / jnp.sqrt(jnp.float32(H))
    w = jax.random.uniform(k_w, (H, V), jnp.float32, -bound, bound)
    b = jax.random.uniform(k_b, (V,), jnp.float32, -bound, bound)

    labels = jax.random.randint(k_lab, (N, L), 1, V, dtype=jnp.int32)  # no blank(0)
    input_lengths = jnp.array([T, T - 2], dtype=jnp.int32)
    label_lengths = jnp.array([L, L - 1], dtype=jnp.int32)

    loss_fn = jax.jit(am_trainer_forward)
    loss = loss_fn(logits, labels, input_lengths, label_lengths, w, b)
    jax.block_until_ready(loss)

    ref = jax.jit(am_trainer_reference)(
        logits, labels, input_lengths, label_lengths, w, b)
    jax.block_until_ready(ref)

    assert loss.shape == () and bool(jnp.isfinite(loss))
    assert bool(jnp.allclose(loss, ref, rtol=5e-2, atol=5e-2)), (loss, ref)
    print("KERNEL_OK")
</pallas_src>

<mosaic_0001>
module attributes {stable_mosaic.version = 11 : i64} {
  func.func @_am_lp_ext_kernel(%arg0: i32, %arg1: i32, %arg2: memref<1x16x128xbf16, #tpu.memory_space<vmem>>, %arg3: memref<128x128xbf16, #tpu.memory_space<vmem>>, %arg4: memref<1x128xf32, #tpu.memory_space<vmem>>, %arg5: memref<1x128x128xbf16, #tpu.memory_space<vmem>>, %arg6: memref<1x1x128xf32, #tpu.memory_space<vmem>>, %arg7: memref<1x16x128xf32, #tpu.memory_space<vmem>>) attributes {dimension_semantics = [#tpu.dimension_semantics<parallel>, #tpu.dimension_semantics<parallel>], iteration_bounds = array<i64: 2, 1>, scalar_prefetch = 0 : i64, scratch_operands = 0 : i64, tpu.core_type = #tpu.core_type<tc>, window_params = [{transform_indices = @transform_0, window_bounds = array<i64: 1, 16, 128>}, {pipeline_mode = #tpu.pipeline_mode<synchronous>, transform_indices = @transform_1, window_bounds = array<i64: 128, 128>}, {pipeline_mode = #tpu.pipeline_mode<synchronous>, transform_indices = @transform_2, window_bounds = array<i64: 1, 128>}, {transform_indices = @transform_3, window_bounds = array<i64: 1, 128, 128>}, {transform_indices = @transform_4, window_bounds = array<i64: 1, 1, 128>}, {transform_indices = @transform_5, window_bounds = array<i64: 1, 16, 128>}]} {
    %c0 = arith.constant 0 : index
    %c0_0 = arith.constant 0 : index
    %c0_1 = arith.constant 0 : index
    %0 = vector.load %arg2[%c0, %c0_0, %c0_1] : memref<1x16x128xbf16, #tpu.memory_space<vmem>>, vector<1x16x128xbf16>
    %1 = vector.shape_cast %0 : vector<1x16x128xbf16> to vector<16x128xbf16>
    %c0_2 = arith.constant 0 : index
    %c0_3 = arith.constant 0 : index
    %2 = vector.load %arg3[%c0_2, %c0_3] : memref<128x128xbf16, #tpu.memory_space<vmem>>, vector<128x128xbf16>
    %cst = arith.constant dense<0.000000e+00> : vector<16x128xf32>
    %3 = tpu.matmul %1, %2, %cst {dimension_numbers = #tpu.dot_dimension_numbers<[1], [0], [0], [1], [0, 0, 1, 1], [], []>} : vector<16x128xbf16>, vector<128x128xbf16>, vector<16x128xf32> -> vector<16x128xf32>
    %c0_4 = arith.constant 0 : index
    %c0_5 = arith.constant 0 : index
    %4 = vector.load %arg4[%c0_4, %c0_5] : memref<1x128xf32, #tpu.memory_space<vmem>>, vector<1x128xf32>
    %5 = vector.broadcast %4 : vector<1x128xf32> to vector<16x128xf32>
    %6 = arith.addf %3, %5 : vector<16x128xf32>
    %cst_6 = arith.constant dense<0xFF800000> : vector<16xf32>
    %7 = vector.multi_reduction <maximumf>, %6, %cst_6 [1] : vector<16x128xf32> to vector<16xf32>
    %8 = vector.shape_cast %7 : vector<16xf32> to vector<16x1xf32>
    %9 = vector.broadcast %8 : vector<16x1xf32> to vector<16x128xf32>
    %10 = arith.subf %6, %9 : vector<16x128xf32>
    %11 = math.exp %10 : vector<16x128xf32>
    %cst_7 = arith.constant dense<0.000000e+00> : vector<16xf32>
    %12 = vector.multi_reduction <add>, %11, %cst_7 [1] : vector<16x128xf32> to vector<16xf32>
    %13 = vector.shape_cast %12 : vector<16xf32> to vector<16x1xf32>
    %14 = math.log %13 : vector<16x1xf32>
    %15 = arith.addf %14, %8 : vector<16x1xf32>
    %c0_8 = arith.constant 0 : index
    %c0_9 = arith.constant 0 : index
    %c0_10 = arith.constant 0 : index
    %16 = vector.load %arg5[%c0_8, %c0_9, %c0_10] : memref<1x128x128xbf16, #tpu.memory_space<vmem>>, vector<1x128x128xbf16>
    %17 = vector.shape_cast %16 : vector<1x128x128xbf16> to vector<128x128xbf16>
    %cst_11 = arith.constant dense<0.000000e+00> : vector<16x128xf32>
    %18 = tpu.matmul %1, %17, %cst_11 {dimension_numbers = #tpu.dot_dimension_numbers<[1], [0], [0], [1], [0, 0, 1, 1], [], []>} : vector<16x128xbf16>, vector<128x128xbf16>, vector<16x128xf32> -> vector<16x128xf32>
    %c0_12 = arith.constant 0 : index
    %c0_13 = arith.constant 0 : index
    %c0_14 = arith.constant 0 : index
    %19 = vector.load %arg6[%c0_12, %c0_13, %c0_14] : memref<1x1x128xf32, #tpu.memory_space<vmem>>, vector<1x1x128xf32>
    %20 = vector.shape_cast %19 : vector<1x1x128xf32> to vector<1x128xf32>
    %21 = vector.broadcast %20 : vector<1x128xf32> to vector<16x128xf32>
    %22 = arith.addf %18, %21 : vector<16x128xf32>
    %23 = vector.broadcast %15 : vector<16x1xf32> to vector<16x128xf32>
    %24 = arith.subf %22, %23 : vector<16x128xf32>
    %c0_15 = arith.constant 0 : index
    %c0_16 = arith.constant 0 : index
    %c0_17 = arith.constant 0 : index
    %25 = vector.load %arg7[%c0_15, %c0_16, %c0_17] : memref<1x16x128xf32, #tpu.memory_space<vmem>>, vector<1x16x128xf32>
    %26 = vector.shape_cast %25 : vector<1x16x128xf32> to vector<16x128xf32>
    %27 = vector.shape_cast %24 : vector<16x128xf32> to vector<1x16x128xf32>
    tpu.vector_store %arg7[%c0_15, %c0_16, %c0_17], %27 {strides = array<i32>} : memref<1x16x128xf32, #tpu.memory_space<vmem>>, vector<1x16x128xf32>,
    return
  }
  func.func @transform_0(%arg0: i32, %arg1: i32) -> (i32, i32, i32) {
    %c0_i32 = arith.constant 0 : i32
    %c0_i32_0 = arith.constant 0 : i32
    return %arg0, %arg1, %c0_i32 : i32, i32, i32
  }
  func.func @transform_1(%arg0: i32, %arg1: i32) -> (i32, i32) {
    %c0_i32 = arith.constant 0 : i32
    %c0_i32_0 = arith.constant 0 : i32
    %c0_i32_1 = arith.constant 0 : i32
    return %c0_i32, %c0_i32_0 : i32, i32
  }
  func.func @transform_2(%arg0: i32, %arg1: i32) -> (i32, i32) {
    %c0_i32 = arith.constant 0 : i32
    %c0_i32_0 = arith.constant 0 : i32
    %c0_i32_1 = arith.constant 0 : i32
    return %c0_i32, %c0_i32_0 : i32, i32
  }
  func.func @transform_3(%arg0: i32, %arg1: i32) -> (i32, i32, i32) {
    %c0_i32 = arith.constant 0 : i32
    %c0_i32_0 = arith.constant 0 : i32
    %c0_i32_1 = arith.constant 0 : i32
    return %arg0, %c0_i32, %c0_i32_0 : i32, i32, i32
  }
  func.func @transform_4(%arg0: i32, %arg1: i32) -> (i32, i32, i32) {
    %c0_i32 = arith.constant 0 : i32
    %c0_i32_0 = arith.constant 0 : i32
    %c0_i32_1 = arith.constant 0 : i32
    return %arg0, %c0_i32, %c0_i32_0 : i32, i32, i32
  }
  func.func @transform_5(%arg0: i32, %arg1: i32) -> (i32, i32, i32) {
    %c0_i32 = arith.constant 0 : i32
    %c0_i32_0 = arith.constant 0 : i32
    return %arg0, %arg1, %c0_i32 : i32, i32, i32
  }
}

</mosaic_0001>

<bundles_post_ra>
// kernel: am_trainer_forward.1
= control target key start
LH: loop header
LB: loop body
LE: loop exit
PB: predicated region body
PF: predicated region fallthrough
CT: control target
= control target key end

     0   :  { %s1643_s0 = inlined_call_operand.hbm [shape: bf16[2,16,128], index: 0, kind: input, shape index: {}]   ;;  %s1644_s1 = inlined_call_operand.hbm [shape: bf16[128,128], index: 1, kind: input, shape index: {}]   ;;  %s1645_s2 = inlined_call_operand.hbm [shape: f32[1,128], index: 2, kind: input, shape index: {}]   ;;  %s1646_s3 = inlined_call_operand.hbm [shape: bf16[2,128,128], index: 3, kind: input, shape index: {}]   ;;  %s1647_s4 = inlined_call_operand.hbm [shape: f32[2,1,128], index: 4, kind: input, shape index: {}]   ;;  %s1648_s5 = inlined_call_operand.hbm [shape: f32[2,16,128], index: 5, kind: output, shape index: {}]  }
   0x1   :  { %1667 = sst [smem:[#allocation18_spill]] %s1644_s1 }
   0x2   :  { %1668 = sst [smem:[#allocation19_spill]] %s1645_s2 }
   0x3   :  { %1669 = sst [smem:[#allocation20_spill]] %s1646_s3 }
   0x4   :  { %1670 = sst [smem:[#allocation21_spill]] %s1648_s5 }
   0x5   :  { %10 = vsyncpa [#allocation3], 0 }
   0x6   :  { %12 = vsyncpa [#allocation3 + $0x1], 0 }
   0x7   :  { %13 = vsyncpa [#allocation6], 0 }
   0x8   :  { %14 = vsyncpa [#allocation9], 0 }
   0x9   :  { %16 = vsyncpa [#allocation9 + $0x1], 0 }
   0xa   :  { %17 = vsyncpa [#allocation4], 0 }
   0xb   :  { %19 = vsyncpa [#allocation4 + $0x1], 0  ;;  %s1288_s18 = smov 0   ;;  %s1290_s19 = smov 0  }
   0xc   :  { %s1292_s20 = smov 0   ;;  %s1294_s21 = smov 0  }
   0xd   :  { %s1296_s22 = smov 0   ;;  %s1298_s23 = smov 0  }
   0xe LB: > { %1671 = sst [smem:[#allocation16_spill]] %s1224_s18  ;;  %s1319_s24 = sadd.s32 4294967295, %s1244_s23   ;;  %s1244_s23 = sphi %s1298_s23, %s25_s23   ;;  %s1240_s22 = sphi %s1296_s22, %s1709_s22   ;;  %s1236_s21 = sphi %s1294_s21, %s1708_s21   ;;  %s1232_s20 = sphi %s1292_s20, %s1707_s20   ;;  %s1228_s19 = sphi %s1290_s19, %s1706_s19   ;;  %s1224_s18 = sphi %s1288_s18, %s1705_s18  }
   0xf   : > { %s781_s25 = sadd.s32 4294967294, %s1244_s23   ;;  %p53_p0 = scmp.ne.s32.totalorder %s1232_s20, %s1228_s19 }
  0x10   : > { %p54_p1 = scmp.eq.s32.totalorder %s1244_s23, 0  ;;  %p59_p2 = scmp.ne.s32.totalorder %s1228_s19, %s1224_s18 }
  0x11   : > { %p1649_p3 = scmp.eq.s32.totalorder %s1319_s24, 0  ;;  %p179_p4 = scmp.eq.s32.totalorder %s1319_s24, 1 }
  0x12   : > { %p1330_p5 = por %p54_p1, %p53_p0  ;;  %p185_p6 = scmp.eq.s32.totalorder %s781_s25, 1 }
  0x13   : > { %p1336_p7 = por %p1649_p3, %p59_p2  ;;  %p1340_p8 = por %p179_p4, %p53_p0 }
  0x14   : > { %p1344_p9 = por %p185_p6, %p59_p2  ;;  %p782_p10 = scmp.ge.s32.totalorder %s1244_s23, 1 }
  0x15   : > { %s1673_s28 = scalar_select %p1336_p7, 1, 0 }
  0x16   : > { %s1674_s29 = scalar_select %p1340_p8, 1, 0 }
  0x17   : > { %s1675_s30 = scalar_select %p1344_p9, 1, 0 }
  0x18   : > { %p192_p11 = scmp.lt.s32.totalorder %s1244_s23, 3  ;;  %s1246_s7 = smov [#allocation5]  }
  0x19   : > { %1676 = sst [smem:[#allocation17_spill]] %s1675_s30  ;;  %s204_s8 = sshll.u32 %s1246_s7, 4  ;;  %s1354_s8 = int_to_ptr.vmem [resolvable:$true] %s204_s8 }
  0x1a   : > { %p1350_p12 = pnand %p782_p10, %p192_p11  ;;  %s37_s10 = sadd.s32 1, %s1240_s22 }
  0x1b   : > { %s1368_s11 = sand.u32 1, %s1232_s20   ;;  %p1370_p4 = scmp.ge.s32.totalorder %s37_s10, 2 }
  0x1c   : > { %s1677_s6 = scalar_select %p1350_p12, 1, 0 }
  0x1d   : > { %p900_p13 = pneg %p1350_p12  ;;  %s1680_s1 = sld [smem:[#allocation18_spill]] }
  0x1f   : > { %p1362_p2 = pnand %p900_p13, %p1649_p3 }
  0x21   : > { %s1678_s9 = scalar_select %p1362_p2, 1, 0 }
  0x22   : > { %p1660_p10 = pneg %p1362_p2 }
  0x23   : > { %s1008_s15 = scalar_lea.hbm %s1680_s1, 1024 }
  0x24   : > { %p1009_p6 = scmp.ne.s32.totalorder %s1680_s1, %s1008_s15  ;;  %p1015_p0 = scmp.lt.u32.totalorder %s1008_s15, %s1680_s1 }
  0x26   : > { %p1011_p11 = pnand %p1660_p10, %p1009_p6 }
  0x28   : > { %p1012_p13 = pneg %p1011_p11 }
  0x2a   : > { %p1017_p3 = pnand %p1015_p0, %p1012_p13 }
  0x2c   : > { %1020 = shalt.err (!%p1017_p3)
}
  0x2d   : > { %s1021_s13 = scalar_lea.vmem %s1354_s8, 1024  ;;  %p1029_p7 = scmp.lt.s32.totalorder %s1354_s8, %s1354_s8 }
  0x2e   : > { %p1022_p1 = scmp.ne.s32.totalorder %s1354_s8, %s1021_s13  ;;  %p1030_p6 = scmp.lt.s32.totalorder %s1021_s13, %s1021_s13 }
  0x30   : > { %p1024_p9 = pnand %p1022_p1, %p1660_p10  ;;  %p1031_p11 = por %p1030_p6, %p1029_p7 }
  0x32   : > { %p1025_p8 = pneg %p1024_p9 }
  0x34   : > { %p1032_p12 = pnand %p1031_p11, %p1025_p8 }
  0x36   : > { %1035 = shalt.err (!%p1032_p12)
}
  0x37   : > { %s1656_s14 = smov 64   ;;  %s1658_s15 = smov 4  }
  0x38   : > { %903 = dma.hbm_to_vmem [thread:$0]  (!%p1362_p2), %s1680_s1, 1024, %s1354_s8, [#allocation6], %s1656_s14, %s1656_s14, %s1658_s15  }
  0x39   : > { %s1711_s10 = smov (%p1370_p4, %s37_s10), 0  ;;  %p1681_p3 = scmp.lt.s32.totalorder %s1244_s23, 2 }
  0x3a   : > { %s252_s7 = sand.u32 1, %s1244_s23   ;;  %s41_s13 = ssub.s32 %s1240_s22, %s1711_s10 }
  0x3b   : > { %p1412_p7 = pnand %p1681_p3, %p1330_p5  ;;  %p44_p8 = scmp.eq.s32.totalorder %s41_s13, 0 }
  0x3c   : > { %s789_s26 = sshll.u32 %s1368_s11, 6  ;;  %s824_s30 = sshll.u32 %s1240_s22, 10 }
  0x3d   : > { %s1682_s25 = scalar_select %p1412_p7, 1, 0 }
  0x3e   : > { %s1683_s18 = sadd.s32 1, %s1232_s20  ;;  %s1684_s3 = sld [smem:[#allocation20_spill]] }
  0x3f   : > { %s1424_s5 = scalar_select %p44_p8, %s1232_s20, %s1683_s18  }
  0x40   : > { %s256_s27 = scalar_lea.vmem [#allocation8], %s789_s26  ;;  %s1249_s14 = smov [#allocation7]  }
  0x41   : > { %s263_s17 = sshll.u32 %s256_s27, 4  ;;  %s1433_s13 = sshll.u32 %s1249_s14, 4  ;;  %s1431_s17 = int_to_ptr.vmem [resolvable:$true] %s263_s17  ;;  %s219_s13 = int_to_ptr.vmem [resolvable:$true] %s1433_s13 }
  0x42   : > { %s1435_s15 = scalar_lea.sflag [#allocation9], %s252_s7  ;;  %p1441_p9 = pneg %p1412_p7 }
  0x44   : > { %s1429_s16 = scalar_lea.hbm %s1684_s3, %s824_s30  ;;  %s1041_s12 = scalar_lea.hbm %s1684_s3, 2048 }
  0x45   : > { %s1036_s18 = scalar_lea.hbm %s1429_s16, 1024  ;;  %p1042_p1 = scmp.lt.u32.totalorder %s1429_s16, %s1684_s3 }
  0x46   : > { %p1037_p5 = scmp.ne.s32.totalorder %s1429_s16, %s1036_s18  ;;  %p1043_p4 = scmp.lt.u32.totalorder %s1041_s12, %s1036_s18 }
  0x47   : > { %s1685_s8 = scalar_select %p1441_p9, 1, 0 }
  0x48   : > { %p1039_p12 = pnand %p1441_p9, %p1037_p5  ;;  %p1044_p13 = por %p1043_p4, %p1042_p1 }
  0x49   : > { %p1045_p6 = scmp.lt.u32.totalorder %s1036_s18, %s1429_s16 }
  0x4a   : > { %p1040_p0 = pneg %p1039_p12 }
  0x4b   : > { %p1046_p11 = por %p1045_p6, %p1044_p13 }
  0x4d   : > { %p1047_p3 = pnand %p1046_p11, %p1040_p0 }
  0x4f   : > { %1050 = shalt.err (!%p1047_p3)
}
  0x50   : > { %s1051_s7 = scalar_lea.vmem %s1431_s17, 1024  ;;  %s1250_s26 = smov [#allocation8]  }
  0x51   : > { %p1052_p8 = scmp.ne.s32.totalorder %s1431_s17, %s1051_s7  ;;  %s1056_s30 = sshll.u32 %s1250_s26, 4  ;;  %s1057_s30 = int_to_ptr.vmem [resolvable:$false] %s1056_s30 }
  0x52   : > { %s1058_s27 = scalar_lea.vmem %s1057_s30, 2048  ;;  %p1059_p10 = scmp.lt.s32.totalorder %s1431_s17, %s1057_s30 }
  0x53   : > { %p1054_p5 = pnand %p1052_p8, %p1441_p9  ;;  %p1060_p2 = scmp.lt.s32.totalorder %s1058_s27, %s1051_s7 }
  0x55   : > { %p1055_p12 = pneg %p1054_p5  ;;  %p1061_p1 = por %p1060_p2, %p1059_p10 }
  0x57   : > { %p1062_p4 = pnand %p1061_p1, %p1055_p12 }
  0x59   : > { %1065 = shalt.err (!%p1062_p4)
}
  0x5a   : > { %s1686_s18 = smov 4   ;;  %s1687_s12 = smov 64  }
  0x5b   : > { %913 = dma.hbm_to_vmem [thread:$0]  (!%p1412_p7), %s1429_s16, 1024, %s1431_s17, %s1435_s15, %s1687_s12, %s1687_s12, %s1686_s18  }
  0x5c   : > { %s1688_s2 = sld [smem:[#allocation19_spill]]  ;;  %p1689_p10 = scmp.ne.s32.totalorder %s1678_s9, 0 }
  0x5e   : > { %p1690_p0 = pneg %p1689_p10 }
  0x62   : > { %s1066_s30 = scalar_lea.hbm %s1688_s2, 16 }
  0x63   : > { %p1067_p2 = scmp.ne.s32.totalorder %s1688_s2, %s1066_s30  ;;  %p1073_p11 = scmp.lt.u32.totalorder %s1066_s30, %s1688_s2 }
  0x65   : > { %p1069_p13 = pnand %p1067_p2, %p1690_p0 }
  0x67   : > { %p1070_p6 = pneg %p1069_p13 }
  0x69   : > { %p1075_p3 = pnand %p1073_p11, %p1070_p6 }
  0x6b   : > { %1078 = shalt.err (!%p1075_p3)
}
  0x6c   : > { %s1079_s16 = scalar_lea.vmem %s219_s13, 16  ;;  %p1691_p5 = pmov %p1690_p0 }
  0x6d   : > { %p1080_p8 = scmp.ne.s32.totalorder %s219_s13, %s1079_s16  ;;  %s1086_s17 = scalar_lea.vmem %s219_s13, 32 }
  0x6e   : > { %p1087_p4 = scmp.lt.s32.totalorder %s219_s13, %s219_s13  ;;  %p1088_p7 = scmp.lt.s32.totalorder %s1086_s17, %s1079_s16 }
  0x6f   : > { %p1082_p12 = pnand %p1080_p8, %p1691_p5 }
  0x70   : > { %p1089_p9 = por %p1088_p7, %p1087_p4 }
  0x71   : > { %p1083_p1 = pneg %p1082_p12 }
  0x73   : > { %p1090_p0 = pnand %p1089_p9, %p1083_p1 }
  0x75   : > { %1093 = shalt.err (!%p1090_p0)
}
  0x76   : > { %906 = dma.hbm_to_vmem [thread:$0]  (!%p1689_p10), %s1688_s2, 16, %s219_s13, [#allocation6]  }
  0x77   : > { %s786_s3 = sshll.u32 %s1368_s11, 3  ;;  %s823_s26 = sshll.u32 %s1240_s22, 7 }
  0x78   : > { %s1494_s27 = scalar_lea.hbm %s1643_s0, %s823_s26  ;;  %s233_s9 = scalar_lea.vmem [#allocation2], %s786_s3 }
  0x79   : > { %s242_s16 = sshll.u32 %s233_s9, 4  ;;  %s792_s17 = sshll.u32 %s1240_s22, 4  ;;  %s1496_s16 = int_to_ptr.vmem [resolvable:$true] %s242_s16 }
  0x7a   : > { %s230_s14 = scalar_lea.sflag [#allocation3], %s1368_s11  ;;  %s1094_s1 = scalar_lea.hbm %s1494_s27, 128 }
  0x7b   : > { %p1095_p7 = scmp.ne.s32.totalorder %s1494_s27, %s1094_s1  ;;  %p1692_p9 = scmp.ne.s32.totalorder %s1685_s8, 0 }
  0x7c   : > { %s1099_s26 = scalar_lea.hbm %s1643_s0, 256  ;;  %p1100_p13 = scmp.lt.u32.totalorder %s1494_s27, %s1643_s0 }
  0x7d   : > { %p1097_p2 = pnand %p1095_p7, %p1692_p9  ;;  %p1101_p6 = scmp.lt.u32.totalorder %s1099_s26, %s1094_s1 }
  0x7e   : > { %p1103_p3 = scmp.lt.u32.totalorder %s1094_s1, %s1494_s27 }
  0x7f   : > { %p1098_p10 = pneg %p1097_p2  ;;  %p1102_p11 = por %p1101_p6, %p1100_p13 }
  0x81   : > { %p1104_p8 = por %p1103_p3, %p1102_p11 }
  0x83   : > { %p1105_p5 = pnand %p1104_p8, %p1098_p10 }
  0x85   : > { %1108 = shalt.err (!%p1105_p5)
}
  0x86   : > { %s1109_s3 = scalar_lea.vmem %s1496_s16, 128  ;;  %s1251_s2 = smov [#allocation2]  }
  0x87   : > { %p1110_p12 = scmp.ne.s32.totalorder %s1496_s16, %s1109_s3  ;;  %s1114_s9 = sshll.u32 %s1251_s2, 4  ;;  %s1115_s9 = int_to_ptr.vmem [resolvable:$false] %s1114_s9 }
  0x88   : > { %s1116_s13 = scalar_lea.vmem %s1115_s9, 256  ;;  %p1117_p0 = scmp.lt.s32.totalorder %s1496_s16, %s1115_s9 }
  0x89   : > { %p1112_p1 = pnand %p1110_p12, %p1692_p9  ;;  %p1118_p7 = scmp.lt.s32.totalorder %s1116_s13, %s1109_s3 }
  0x8b   : > { %p1113_p4 = pneg %p1112_p1  ;;  %p1119_p2 = por %p1118_p7, %p1117_p0 }
  0x8d   : > { %p1120_p13 = pnand %p1119_p2, %p1113_p4 }
  0x8f   : > { %1123 = shalt.err (!%p1120_p13)
}
  0x90   : > { %p1693_p10 = scmp.ne.s32.totalorder %s1682_s25, 0  ;;  %s1531_s30 = scalar_lea.hbm %s1647_s4, %s792_s17 }
  0x91   : > { %s276_s7 = scalar_lea.vmem [#allocation10], %s1368_s11  ;;  %s1124_s2 = scalar_lea.hbm %s1531_s30, 16 }
  0x92   : > { %910 = dma.hbm_to_vmem [thread:$0]  (!%p1693_p10), %s1494_s27, 128, %s1496_s16, %s230_s14, %s1687_s12, %s1687_s12, %s1686_s18  }
  0x93   : > { %s283_s3 = sshll.u32 %s276_s7, 4  ;;  %p1125_p6 = scmp.ne.s32.totalorder %s1531_s30, %s1124_s2  ;;  %s284_s3 = int_to_ptr.vmem [resolvable:$true] %s283_s3 }
  0x94   : > { %s1129_s12 = scalar_lea.hbm %s1647_s4, 32  ;;  %p1130_p8 = scmp.lt.u32.totalorder %s1531_s30, %s1647_s4 }
  0x95   : > { %p1127_p11 = pnand %p1125_p6, %p1692_p9  ;;  %p1131_p5 = scmp.lt.u32.totalorder %s1129_s12, %s1124_s2 }
  0x96   : > { %p1133_p1 = scmp.lt.u32.totalorder %s1124_s2, %s1531_s30 }
  0x97   : > { %p1128_p3 = pneg %p1127_p11  ;;  %p1132_p12 = por %p1131_p5, %p1130_p8 }
  0x99   : > { %p1134_p4 = por %p1133_p1, %p1132_p12 }
  0x9b   : > { %p1135_p0 = pnand %p1134_p4, %p1128_p3 }
  0x9d   : > { %1138 = shalt.err (!%p1135_p0)
}
  0x9e   : > { %s1139_s11 = scalar_lea.vmem %s284_s3, 16  ;;  %s1252_s17 = smov [#allocation10]  }
  0x9f   : > { %p1140_p7 = scmp.ne.s32.totalorder %s284_s3, %s1139_s11  ;;  %s1144_s14 = sshll.u32 %s1252_s17, 4  ;;  %s1145_s14 = int_to_ptr.vmem [resolvable:$false] %s1144_s14 }
  0xa0   : > { %s1146_s13 = scalar_lea.vmem %s1145_s14, 32  ;;  %p1147_p6 = scmp.lt.s32.totalorder %s284_s3, %s1145_s14 }
  0xa1   : > { %p1142_p2 = pnand %p1140_p7, %p1692_p9  ;;  %p1148_p11 = scmp.lt.s32.totalorder %s1146_s13, %s1139_s11 }
  0xa3   : > { %p1143_p13 = pneg %p1142_p2  ;;  %p1149_p10 = por %p1148_p11, %p1147_p6 }
  0xa5   : > { %p1150_p5 = pnand %p1149_p10, %p1143_p13 }
  0xa7   : > { %1153 = shalt.err (!%p1150_p5)
}
  0xa8   : > { %p1694_p8 = scmp.ne.s32.totalorder %s1682_s25, 0  ;;  %p1695_p3 = scmp.ne.s32.totalorder %s1677_s6, 0 }
  0xa9   : > { %s1555_s8 = sand.u32 (!%p1695_p3), 1, %s1228_s19   ;;  %p1696_p9 = scmp.ne.s32.totalorder (!%p1695_p3), %s1673_s28, 0 }
  0xaa   : > { %916 = dma.hbm_to_vmem [thread:$0]  (!%p1694_p8), %s1531_s30, 16, %s284_s3, %s1435_s15  }
  0xab   : > { %292 = sbr.rel (%p1695_p3) target bundleno = 768 (0x300), region = 40  ;;  %s794_s1 = sshll.u32 (!%p1695_p3), %s1555_s8, 3 }
  0xac   : > { %s295_s26 = scalar_lea.sflag (!%p1695_p3), [#allocation3], %s1555_s8  ;;  %s1559_s7 = scalar_lea.vmem (!%p1695_p3), [#allocation2], %s794_s1 }
  0xb2   : > { %1207 = dma.done.wait (%p1696_p9), %s295_s26, 128  }
  0xb3   : > { %1209 = vsyncadd (%p1696_p9), %s295_s26, 4294967168  ;;  %p1697_p10 = scmp.eq.s32.totalorder %s1319_s24, 0 }
  0xb5   : > { %1211 = dma.done.wait (%p1697_p10), [#allocation6], 1040   ;;  %p1698_p12 = pmov %p1697_p10 }
  0xb6   : > { %s311_s6 = sand.u32 1, %s1319_s24   ;;  %s797_s15 = sshll.u32 %s1555_s8, 6 }
  0xb7   : > { %1213 = vsyncadd (%p1698_p12), [#allocation6], 4294966256  ;;  %s312_s25 = scalar_lea.sflag [#allocation9], %s311_s6  ;;  %s1571_s30 = scalar_lea.vmem [#allocation8], %s797_s15 }
  0xb8   : > { %1215 = dma.done.wait (%p1696_p9), %s312_s25, 1040  }
  0xb9   : > { %1217 = vsyncadd (%p1696_p9), %s312_s25, 4294966256  ;;  %v1253_v0 = vmov 0.0   ;;  %vm1254_vm0 = vmmov 0   ;;  %v983_v1 = vld [vmem:[#allocation5] sm:$0xff]   ;;  %v984_v2 = vld [vmem:[#allocation5 + $0x8] sm:$0xff]   ;;  %s323_s24 = scalar_lea.vmem [#allocation10], %s1555_s8 }
  0xba   : > { %844 = vmatprep.subr.bf16.mxu0 %v1253_v0  ;;  %860 = vmatprep.mubr.msk.bf16.mxu0 %vm1254_vm0, %v1253_v0  ;;  %v985_v3 = vld [vmem:[#allocation5 + $0x10] sm:$0xff]   ;;  %v986_v4 = vld [vmem:[#allocation5 + $0x18] sm:$0xff]   ;;  %v987_v5 = vld [vmem:[#allocation5 + $0x20] sm:$0xff]   ;;  %s798_s28 = sshll.u32 %s1555_s8, 4  ;;  %s825_s9 = sshll.u32 %s1236_s21, 8 }
  0xbb   : > { %864 = vmatprep.subr.bf16.mxu1 %v1253_v0  ;;  %880 = vmatprep.mubr.msk.bf16.mxu1 %vm1254_vm0, %v1253_v0  ;;  %v988_v6 = vld [vmem:[#allocation5 + $0x28] sm:$0xff]   ;;  %v989_v7 = vld [vmem:[#allocation5 + $0x30] sm:$0xff]   ;;  %v990_v8 = vld [vmem:[#allocation5 + $0x38] sm:$0xff]   ;;  %s358_s3 = scalar_lea.vmem [#allocation11], %s798_s28  ;;  %s1699_s27 = sld [smem:[#allocation21_spill]] }
  0xbc   : > { %845 = vmatpush3.bf16.msra.mxu0 %v983_v1  ;;  %v991_v9 = vld [vmem:[%s1559_s7] sm:$0xff]   ;;  %v992_v10 = vld [vmem:[%s1571_s30] sm:$0xff]   ;;  %v799_v18 = vld [vmem:[#allocation7] ss:$0 sm:$0xff]  ;;  %s634_s2 = sshll.u32 %s358_s3, 4  ;;  %s619_s11 = scalar_lea.sflag [#allocation4], %s1555_s8  ;;  %s1589_s2 = int_to_ptr.vmem [resolvable:$true] %s634_s2 }
  0xbd   : > { %846 = vmatprep.subr.bf16.mxu0 %v1253_v0  ;;  %865 = vmatpush3.bf16.msra.mxu1 %v992_v10  ;;  %v993_v11 = vld [vmem:[%s1571_s30 + $0x8] sm:$0xff]   ;;  %v994_v12 = vld [vmem:[%s1571_s30 + $0x10] sm:$0xff]   ;;  %v995_v13 = vld [vmem:[%s1571_s30 + $0x18] sm:$0xff]   ;;  %s1154_s17 = scalar_lea.vmem %s1589_s2, 256  ;;  %p1700_p4 = scmp.ne.s32.totalorder %s1674_s29, 0 }
  0xbe   : > { %866 = vmatprep.subr.bf16.mxu1 %v1253_v0  ;;  %v996_v14 = vld [vmem:[%s1571_s30 + $0x20] sm:$0xff]   ;;  %v997_v15 = vld [vmem:[%s1571_s30 + $0x28] sm:$0xff]   ;;  %v998_v16 = vld [vmem:[%s1571_s30 + $0x30] sm:$0xff]   ;;  %p1155_p1 = scmp.ne.s32.totalorder %s1589_s2, %s1154_s17  ;;  %s1255_s21 = smov [#allocation11]  }
  0xbf   : > { %v999_v17 = vld [vmem:[%s1571_s30 + $0x38] sm:$0xff]   ;;  %v809_v39 = vld [vmem:[%s323_s24] ss:$0 sm:$0xff]  ;;  %s1158_s14 = sshll.u32 %s1255_s21, 4  ;;  %s1159_s14 = int_to_ptr.vmem [resolvable:$false] %s1158_s14 }
  0xc0   : > { %847 = vmatpush3.bf16.msra.mxu0 %v984_v2  ;;  %p1156_p0 = pnand %p1155_p1, %p1700_p4  ;;  %s1160_s13 = scalar_lea.vmem %s1159_s14, 512 }
  0xc1   : > { %848 = vmatprep.subr.bf16.mxu0 %v1253_v0  ;;  %867 = vmatpush3.bf16.msra.mxu1 %v993_v11  ;;  %s1594_s16 = scalar_lea.hbm %s1699_s27, %s825_s9  ;;  %p1161_p2 = scmp.lt.s32.totalorder %s1589_s2, %s1159_s14 }
  0xc2   : > { %868 = vmatprep.subr.bf16.mxu1 %v1253_v0  ;;  %p1157_p7 = pneg %p1156_p0  ;;  %p1162_p13 = scmp.lt.s32.totalorder %s1160_s13, %s1154_s17 }
  0xc4   : > { %849 = vmatpush3.bf16.msra.mxu0 %v985_v3  ;;  %p1163_p6 = por %p1162_p13, %p1161_p2 }
  0xc5   : > { %850 = vmatprep.subr.bf16.mxu0 %v1253_v0  ;;  %869 = vmatpush3.bf16.msra.mxu1 %v994_v12 }
  0xc6   : > { %870 = vmatprep.subr.bf16.mxu1 %v1253_v0  ;;  %p1164_p11 = pnand %p1163_p6, %p1157_p7 }
  0xc8   : > { %851 = vmatpush3.bf16.msra.mxu0 %v986_v4 }
  0xc9   : > { %852 = vmatprep.subr.bf16.mxu0 %v1253_v0  ;;  %871 = vmatpush3.bf16.msra.mxu1 %v995_v13 }
  0xca   : > { %872 = vmatprep.subr.bf16.mxu1 %v1253_v0 }
  0xcc   : > { %853 = vmatpush3.bf16.msra.mxu0 %v987_v5 }
  0xcd   : > { %854 = vmatprep.subr.bf16.mxu0 %v1253_v0  ;;  %873 = vmatpush3.bf16.msra.mxu1 %v996_v14 }
  0xce   : > { %874 = vmatprep.subr.bf16.mxu1 %v1253_v0 }
  0xd0   : > { %855 = vmatpush3.bf16.msra.mxu0 %v988_v6 }
  0xd1   : > { %856 = vmatprep.subr.bf16.mxu0 %v1253_v0  ;;  %875 = vmatpush3.bf16.msra.mxu1 %v997_v15 }
  0xd2   : > { %876 = vmatprep.subr.bf16.mxu1 %v1253_v0 }
  0xd4   : > { %857 = vmatpush3.bf16.msra.mxu0 %v989_v7 }
  0xd5   : > { %858 = vmatprep.subr.bf16.mxu0 %v1253_v0  ;;  %877 = vmatpush3.bf16.msra.mxu1 %v998_v16 }
  0xd6   : > { %878 = vmatprep.subr.bf16.mxu1 %v1253_v0 }
  0xd8   : > { %859 = vmatpush3.bf16.msra.mxu0 %v990_v8 }
  0xd9   : > { %879 = vmatpush3.bf16.msra.mxu1 %v999_v17 }
  0xdb   : > { %861 = vmatmul.mubr.bf16.vlgmr.msra.gmra.mrb[0].mxu0 %v991_v9 }
  0xdc   : > { %881 = vmatmul.mubr.bf16.vlgmr.msra.gmra.mrb[0].mxu1 %v991_v9 }
 0x1ae   : > { %v475_v19 = vpop.f32.mrb[0].mxu0 }
 0x1af   : > { %v476_v20 = vadd.f32 %v799_v18, %v475_v19  ;;  %v862_v21 = vpop.f32.mrb[1].mxu0  ;;  %v607_v33 = vpop.f32.mrb[0].mxu1 }
 0x1b0   : > { %v478_v22 = vpop.f32.mrb[2].mxu0  ;;  %v882_v34 = vpop.f32.mrb[1].mxu1  ;;  %v608_v42 = vadd.f32 %v809_v39, %v607_v33 }
 0x1b1   : > { %482 = vmax.xlane.f32.xlu0 %v476_v20  ;;  %v863_v23 = vpop.f32.mrb[3].mxu0  ;;  %v479_v24 = vadd.f32 %v799_v18, %v478_v22  ;;  %v610_v35 = vpop.f32.mrb[2].mxu1 }
 0x1b2   : > { %v883_v36 = vpop.f32.mrb[3].mxu1  ;;  %v611_v48 = vadd.f32 %v809_v39, %v610_v35 }
 0x1b5   : > { %484 = vmax.xlane.f32.xlu0 %v479_v24 }
 0x23e   : > { %v483_v25 = vpop.xlane.xlu0 %482 }
 0x23f   : > { %v486_v26 = vsub.f32 %v476_v20, %v483_v25 }
 0x241   : > { %v488_v27 = vmul.f32 1.442695, %v486_v26 }
 0x242   : > { %v485_v28 = vpop.xlane.xlu0 %484 }
 0x243   : > { %v487_v29 = vsub.f32 %v479_v24, %v485_v28  ;;  %1000 = vpow2.f32 %v488_v27 }
 0x245   : > { %v490_v30 = vmul.f32 1.442695, %v487_v29 }
 0x247   : > { %1002 = vpow2.f32 %v490_v30 }
 0x24d   : > { %v1001_v31 = vpop.eup %1000 }
 0x24e   : > { %492 = vadd.xlane.f32.xlu1 %v1001_v31 }
 0x251   : > { %v1003_v32 = vpop.eup %1002 }
 0x252   : > { %494 = vadd.xlane.f32.xlu1 %v1003_v32 }
 0x2db   : > { %v493_v37 = vpop.xlane.xlu1 %492 }
 0x2dc   : > { %1004 = vlog2.f32 %v493_v37 }
 0x2df   : > { %v495_v38 = vpop.xlane.xlu1 %494 }
 0x2e0   : > { %1006 = vlog2.f32 %v495_v38 }
 0x2e6   : > { %v1005_v40 = vpop.eup %1004 }
 0x2e7   : > { %v497_v41 = vmul.f32 0.6931472, %v1005_v40 }
 0x2e9   : > { %v500_v43 = vadd.f32 %v497_v41, %v483_v25 }
 0x2ea   : > { %v1007_v44 = vpop.eup %1006 }
 0x2eb   : > { %v499_v45 = vmul.f32 0.6931472, %v1007_v44  ;;  %v614_v46 = vsub.f32 %v608_v42, %v500_v43 }
 0x2ed   : > { %616 = vst [vmem:[%s358_s3] sm:$0xff] %v614_v46  ;;  %v501_v47 = vadd.f32 %v499_v45, %v485_v28 }
 0x2ef   : > { %v615_v49 = vsub.f32 %v611_v48, %v501_v47 }
 0x2f1   : > { %617 = vst [vmem:[%s358_s3 + $0x8] sm:$0xff] %v615_v49 }
 0x2f2   : > { %1167 = shalt.err (!%p1164_p11)
}
 0x2f3   : > { %s1168_s1 = scalar_lea.hbm %s1594_s16, 256  ;;  %s1172_s6 = scalar_lea.hbm %s1699_s27, 512 }
 0x2f4   : > { %p1169_p5 = scmp.ne.s32.totalorder %s1594_s16, %s1168_s1  ;;  %p1173_p9 = scmp.lt.u32.totalorder %s1594_s16, %s1699_s27 }
 0x2f5   : > { %p1174_p10 = scmp.lt.u32.totalorder %s1172_s6, %s1168_s1  ;;  %p1176_p1 = scmp.lt.u32.totalorder %s1168_s1, %s1594_s16 }
 0x2f6   : > { %p1170_p8 = pnand %p1169_p5, %p1700_p4 }
 0x2f7   : > { %p1175_p12 = por %p1174_p10, %p1173_p9 }
 0x2f8   : > { %p1171_p3 = pneg %p1170_p8 }
 0x2f9   : > { %p1177_p0 = por %p1176_p1, %p1175_p12 }
 0x2fb   : > { %p1178_p7 = pnand %p1177_p0, %p1171_p3 }
 0x2fd   : > { %1181 = shalt.err (!%p1178_p7)
}
 0x2fe   : > { %s1256_s30 = smov 128   ;;  %s1257_s24 = smov 8  }
 0x2ff   : > { %898 = dma.vmem_to_hbm [thread:$0]  (%p1700_p4), %s1589_s2, 256, %s1594_s16, %s619_s11, %s1256_s30, %s1256_s30, %s1257_s24  }
 0x300 PF: > { %s1701_s28 = sld [smem:[#allocation16_spill]]  ;;  %s1702_s3 = sld [smem:[#allocation17_spill]] }
 0x301   : > { %p1704_p13 = scmp.ge.s32.totalorder %s1244_s23, 2 }
 0x306   : > { %s649_s9 = sand.u32 1, %s1701_s28   ;;  %p1703_p2 = scmp.ne.s32.totalorder %s1702_s3, 0 }
 0x307   : > { %s650_s18 = scalar_lea.sflag [#allocation4], %s649_s9 }
 0x308   : > { %p918_p6 = pnand %p1704_p13, %p1703_p2 }
 0x30a   : > { %1219 = dma.done.wait (!%p918_p6), %s650_s18, 256  }
 0x30b   : > { %1221 = vsyncadd (!%p918_p6), %s650_s18, 4294967040  ;;  %s25_s23 = sadd.s32 1, %s1244_s23   ;;  %s1705_s18 = smov %s1228_s19 }
 0x30c   : > { %p22_p11 = scmp.ge.s32.totalorder %s25_s23, 4   ;;  %s1706_s19 = smov %s1232_s20 }
 0x30d   : > { %s1707_s20 = smov %s1424_s5  ;;  %s1708_s21 = smov %s1240_s22 }
 0x30e   : > { %s1709_s22 = smov %s1711_s10  ;;  %24 = sbr.rel (!%p22_p11) target bundleno = 14 (0xe), region = 117 }
 0x315   :  { %655 = vsyncpa [#allocation3], 1 }
 0x316   :  { %657 = vsyncpa [#allocation3 + $0x1], 1 }
 0x317   :  { %658 = vsyncpa [#allocation6], 1 }
 0x318   :  { %659 = vsyncpa [#allocation9], 1 }
 0x319   :  { %661 = vsyncpa [#allocation9 + $0x1], 1 }
 0x31a   :  { %662 = vsyncpa [#allocation4], 1 }
 0x31b   :  { %664 = vsyncpa [#allocation4 + $0x1], 1 }

</bundles_post_ra>
